<compile_context>
chip_gen: v5e
topology: v5e:2x2
jax: 0.10.0
libtpu: 0.0.40
codegen_flags: <defaults>
</compile_context>

<pallas_src>
import jax
import jax.numpy as jnp
from jax import lax
from jax.experimental import pallas as pl
from jax.experimental.pallas import tpu as pltpu


def _round_up(x, m):
    return -(-x // m) * m


def _make_scale_iou_kernel(num_levels, rows, chunk_rows, needs_mask):
    """Kernel over one row-chunk of the lane-folded tensors.

    refs = (pred_0, ..., pred_{NL-1}, gt, out)
      pred_i: (B, R, 128) logits chunk (native dtype)
      gt:     (B, R, 128) ground-truth chunk (native dtype)
      out:    (1, 2*NL+1, B, 128) f32 lane-partials for this chunk:
              [0, 0]      = per-lane sum over rows of gt
              [0, 2i+1]   = per-lane sum over rows of sigmoid(pred_i) * gt
              [0, 2i+2]   = per-lane sum over rows of sigmoid(pred_i)
    """

    def kernel(*refs):
        pred_refs = refs[:num_levels]
        gt_ref = refs[num_levels]
        out_ref = refs[num_levels + 1]

        if needs_mask:
            # Last chunk may extend past `rows`; those rows hold garbage from
            # the clamped DMA.  Zero them (branchless; VPU work hidden under
            # the HBM stream).
            c = pl.program_id(0)
            valid = rows - c * chunk_rows
            row_ids = lax.broadcasted_iota(jnp.int32, (chunk_rows, 128), 0)
            keep = row_ids < valid  # (R, 128) bool, broadcasts over batch

        g = gt_ref[...].astype(jnp.float32)  # (B, R, 128)
        if needs_mask:
            g = jnp.where(keep, g, 0.0)

        # Row-axis reduction first (VPU adds); the single cross-lane fold per
        # statistic happens in the tiny JAX epilogue, not on the XLU here.
        stats = [jnp.sum(g, axis=1)]  # (B, 128): sum(gt)

        for p_ref in pred_refs:
            x = p_ref[...].astype(jnp.float32)
            # sigmoid(x) = 0.5 * tanh(0.5 * x) + 0.5  -> one EUP op / element.
            s = 0.5 * jnp.tanh(0.5 * x) + 0.5
            if needs_mask:
                s = jnp.where(keep, s, 0.0)
            stats.append(jnp.sum(s * g, axis=1))  # sum(sigmoid * gt)
            stats.append(jnp.sum(s, axis=1))      # sum(sigmoid)

        # One fused, lane-dense store of all per-chunk partial statistics.
        out_ref[...] = jnp.stack(stats)[None]  # (1, 2*NL+1, B, 128)

    return kernel


def scale_iou(scaled_preds, gt, *, vmem_budget_bytes=12 * 1024 * 1024):
    """scaled_preds: list of (B, C, H, W) logit arrays; gt: (B, C, H, W)."""
    num_levels = len(scaled_preds)
    assert num_levels >= 1
    for p in scaled_preds:
        assert p.shape == gt.shape, "each prediction level must match gt shape"

    B = gt.shape[0]
    L = int(gt.size // B)                 # C*H*W elements per batch row
    rows = -(-L // 128)                   # lane fold: ceil(L / 128)
    pad = rows * 128 - L                  # < 128 zero-pad lanes (often 0)

    def prep(x):
        # Stream native dtype; only pad when L is not lane-aligned.
        if pad:
            # TODO(synk): a manual-DMA (pl.ANY) tail path could avoid this
            # full-tensor pad copy when L % 128 != 0.
            x = jnp.pad(x.reshape(B, L), ((0, 0), (0, pad)))
        return x.reshape(B, rows, 128)

    pred_in = [prep(p) for p in scaled_preds]
    gt_in = prep(gt)

    # ---- chunk sizing: VMEM-budgeted; prefer >= 2 (even) chunks (megacore) --
    stream_itemsize = (sum(jnp.dtype(a.dtype).itemsize for a in pred_in)
                       + jnp.dtype(gt_in.dtype).itemsize)
    # (NL+1) streams x 2 pipeline buffers + ~3 f32-sized in-flight temps.
    per_row_bytes = B * 128 * (2 * stream_itemsize + 3 * 4)
    max_chunk_rows = max(8, (vmem_budget_bytes // per_row_bytes) // 8 * 8)

    if rows <= 8:
        chunk_rows = rows                 # single full-extent chunk (legal)
    else:
        chunk_rows = min(max_chunk_rows, (rows // 8) * 8)
        if rows >= 16 and -(-rows // chunk_rows) < 2:
            # give both v7x TensorCores work
            chunk_rows = min(chunk_rows, _round_up(-(-rows // 2), 8))
        num_chunks = -(-rows // chunk_rows)
        if num_chunks > 1 and num_chunks % 2:
            # best-effort even chunk count for 2-TC load balance
            cand = _round_up(-(-rows // (num_chunks + 1)), 8)
            if 8 <= cand <= (rows // 8) * 8 and (-(-rows // cand)) % 2 == 0:
                chunk_rows = cand
    num_chunks = -(-rows // chunk_rows)
    needs_mask = (rows % chunk_rows) != 0

    num_stats = 2 * num_levels + 1
    in_specs = [pl.BlockSpec((B, chunk_rows, 128), lambda c: (0, c, 0))
                for _ in range(num_levels + 1)]
    out_spec = pl.BlockSpec((1, num_stats, B, 128), lambda c: (c, 0, 0, 0))

    elems = B * rows * 128
    out_bytes = num_chunks * num_stats * B * 128 * 4
    cost = pl.CostEstimate(
        flops=int((6 * num_levels + 2) * elems),
        transcendentals=int(num_levels * elems),
        bytes_accessed=int(sum(a.size * a.dtype.itemsize for a in pred_in)
                           + gt_in.size * gt_in.dtype.itemsize + out_bytes),
    )

    partials = pl.pallas_call(
        _make_scale_iou_kernel(num_levels, rows, chunk_rows, needs_mask),
        out_shape=jax.ShapeDtypeStruct((num_chunks, num_stats, B, 128),
                                       jnp.float32),
        grid_spec=pltpu.PrefetchScalarGridSpec(
            num_scalar_prefetch=0,
            grid=(num_chunks,),
            in_specs=in_specs,
            out_specs=out_spec,
        ),
        compiler_params=pltpu.CompilerParams(
            dimension_semantics=("parallel",),   # chunks are independent
        ),
        cost_estimate=cost,
    )(*pred_in, gt_in)

    # Tiny epilogue: fold chunks + lanes, then the NL*B-scalar IoU algebra.
    sums = jnp.sum(partials, axis=(0, 3))       # (num_stats, B)
    sg = sums[0]                                # sum(gt) per batch
    n = jnp.float32(L)
    eps = jnp.float32(1e-5)
    half_pad = jnp.float32(0.5 * pad)           # sigmoid(0)=0.5 on pad lanes

    loss = jnp.float32(0.0)
    for i in range(num_levels):
        ssg = sums[2 * i + 1]                   # sum(sigmoid * gt)
        ss = sums[2 * i + 2] - half_pad         # sum(sigmoid), pad-corrected
        # IoU(sigmoid(pred), gt)
        iou1 = ssg / (ss + sg - ssg + eps)
        # IoU(1 - sigmoid(pred), 1 - gt) from the same sums
        iand2 = n - ss - sg + ssg
        ior2 = n - ssg
        iou2 = iand2 / (ior2 + eps)
        loss = loss + jnp.sum((1.0 - iou1) + (1.0 - iou2)) / B
    return loss


def _ref_scale_iou(scaled_preds, gt):
    """Pure-JAX reference matching the PyTorch forward exactly."""

    def iou_loss(pred, target):
        b = pred.shape[0]
        p = pred.reshape(b, -1)
        t = target.reshape(b, -1)
        iand = jnp.sum(t * p, axis=1)
        ior = jnp.sum(t, axis=1) + jnp.sum(p, axis=1) - iand
        return jnp.sum(1.0 - iand / (ior + 1e-5)) / b

    loss = jnp.float32(0.0)
    for p in scaled_preds:
        s = jax.nn.sigmoid(p)
        loss = loss + iou_loss(s, gt) + iou_loss(1.0 - s, 1.0 - gt)
    return loss


if __name__ == "__main__":
    key = jax.random.PRNGKey(0)
    NUM_LEVELS = 3

    cases = [
        (2, 1, 16, 16),  # rows=2: single full-extent chunk, no pad, no mask
        (2, 1, 48, 48),  # rows=18: 2 chunks, partial (masked) last chunk
        (2, 1, 20, 20),  # rows=4 with 112 zero-pad lanes (0.5*pad correction)
    ]
    for idx, (B, C, H, W) in enumerate(cases):
        k = jax.random.fold_in(key, idx)
        keys = jax.random.split(k, NUM_LEVELS + 1)
        scaled_preds = [
            jax.random.normal(keys[i], (B, C, H, W), dtype=jnp.float32)
            for i in range(NUM_LEVELS)
        ]
        gt = (jax.random.uniform(keys[-1], (B, C, H, W)) > 0.5).astype(
            jnp.float32)

        loss = jax.block_until_ready(scale_iou(scaled_preds, gt))
        ref = jax.block_until_ready(_ref_scale_iou(scaled_preds, gt))
        assert jnp.allclose(loss, ref, rtol=1e-5, atol=1e-5), (
            (B, C, H, W), loss, ref)

    print("KERNEL_OK")
</pallas_src>

<mosaic_0001>
module attributes {stable_mosaic.version = 11 : i64} {
  func.func @kernel(%arg0: i32, %arg1: memref<2x2x128xf32, #tpu.memory_space<vmem>>, %arg2: memref<2x2x128xf32, #tpu.memory_space<vmem>>, %arg3: memref<2x2x128xf32, #tpu.memory_space<vmem>>, %arg4: memref<2x2x128xf32, #tpu.memory_space<vmem>>, %arg5: memref<1x7x2x128xf32, #tpu.memory_space<vmem>>) attributes {dimension_semantics = [#tpu.dimension_semantics<parallel>], iteration_bounds = array<i64: 1>, scalar_prefetch = 0 : i64, scratch_operands = 0 : i64, tpu.core_type = #tpu.core_type<tc>, window_params = [{transform_indices = @transform_0, window_bounds = array<i64: 2, 2, 128>}, {transform_indices = @transform_1, window_bounds = array<i64: 2, 2, 128>}, {transform_indices = @transform_2, window_bounds = array<i64: 2, 2, 128>}, {transform_indices = @transform_3, window_bounds = array<i64: 2, 2, 128>}, {transform_indices = @transform_4, window_bounds = array<i64: 1, 7, 2, 128>}]} {
    %c0 = arith.constant 0 : index
    %c0_0 = arith.constant 0 : index
    %c0_1 = arith.constant 0 : index
    %0 = vector.load %arg4[%c0, %c0_0, %c0_1] : memref<2x2x128xf32, #tpu.memory_space<vmem>>, vector<2x2x128xf32>
    %cst = arith.constant dense<0.000000e+00> : vector<2x128xf32>
    %1 = vector.multi_reduction <add>, %0, %cst [1] : vector<2x2x128xf32> to vector<2x128xf32>
    %c0_2 = arith.constant 0 : index
    %c0_3 = arith.constant 0 : index
    %c0_4 = arith.constant 0 : index
    %2 = vector.load %arg1[%c0_2, %c0_3, %c0_4] : memref<2x2x128xf32, #tpu.memory_space<vmem>>, vector<2x2x128xf32>
    %cst_5 = arith.constant 5.000000e-01 : f32
    %3 = vector.broadcast %cst_5 : f32 to vector<2x2x128xf32>
    %4 = arith.mulf %3, %2 : vector<2x2x128xf32>
    %5 = math.tanh %4 : vector<2x2x128xf32>
    %cst_6 = arith.constant 5.000000e-01 : f32
    %6 = vector.broadcast %cst_6 : f32 to vector<2x2x128xf32>
    %7 = arith.mulf %6, %5 : vector<2x2x128xf32>
    %cst_7 = arith.constant 5.000000e-01 : f32
    %8 = vector.broadcast %cst_7 : f32 to vector<2x2x128xf32>
    %9 = arith.addf %7, %8 : vector<2x2x128xf32>
    %10 = arith.mulf %9, %0 : vector<2x2x128xf32>
    %cst_8 = arith.constant dense<0.000000e+00> : vector<2x128xf32>
    %11 = vector.multi_reduction <add>, %10, %cst_8 [1] : vector<2x2x128xf32> to vector<2x128xf32>
    %cst_9 = arith.constant dense<0.000000e+00> : vector<2x128xf32>
    %12 = vector.multi_reduction <add>, %9, %cst_9 [1] : vector<2x2x128xf32> to vector<2x128xf32>
    %c0_10 = arith.constant 0 : index
    %c0_11 = arith.constant 0 : index
    %c0_12 = arith.constant 0 : index
    %13 = vector.load %arg2[%c0_10, %c0_11, %c0_12] : memref<2x2x128xf32, #tpu.memory_space<vmem>>, vector<2x2x128xf32>
    %cst_13 = arith.constant 5.000000e-01 : f32
    %14 = vector.broadcast %cst_13 : f32 to vector<2x2x128xf32>
    %15 = arith.mulf %14, %13 : vector<2x2x128xf32>
    %16 = math.tanh %15 : vector<2x2x128xf32>
    %cst_14 = arith.constant 5.000000e-01 : f32
    %17 = vector.broadcast %cst_14 : f32 to vector<2x2x128xf32>
    %18 = arith.mulf %17, %16 : vector<2x2x128xf32>
    %cst_15 = arith.constant 5.000000e-01 : f32
    %19 = vector.broadcast %cst_15 : f32 to vector<2x2x128xf32>
    %20 = arith.addf %18, %19 : vector<2x2x128xf32>
    %21 = arith.mulf %20, %0 : vector<2x2x128xf32>
    %cst_16 = arith.constant dense<0.000000e+00> : vector<2x128xf32>
    %22 = vector.multi_reduction <add>, %21, %cst_16 [1] : vector<2x2x128xf32> to vector<2x128xf32>
    %cst_17 = arith.constant dense<0.000000e+00> : vector<2x128xf32>
    %23 = vector.multi_reduction <add>, %20, %cst_17 [1] : vector<2x2x128xf32> to vector<2x128xf32>
    %c0_18 = arith.constant 0 : index
    %c0_19 = arith.constant 0 : index
    %c0_20 = arith.constant 0 : index
    %24 = vector.load %arg3[%c0_18, %c0_19, %c0_20] : memref<2x2x128xf32, #tpu.memory_space<vmem>>, vector<2x2x128xf32>
    %cst_21 = arith.constant 5.000000e-01 : f32
    %25 = vector.broadcast %cst_21 : f32 to vector<2x2x128xf32>
    %26 = arith.mulf %25, %24 : vector<2x2x128xf32>
    %27 = math.tanh %26 : vector<2x2x128xf32>
    %cst_22 = arith.constant 5.000000e-01 : f32
    %28 = vector.broadcast %cst_22 : f32 to vector<2x2x128xf32>
    %29 = arith.mulf %28, %27 : vector<2x2x128xf32>
    %cst_23 = arith.constant 5.000000e-01 : f32
    %30 = vector.broadcast %cst_23 : f32 to vector<2x2x128xf32>
    %31 = arith.addf %29, %30 : vector<2x2x128xf32>
    %32 = arith.mulf %31, %0 : vector<2x2x128xf32>
    %cst_24 = arith.constant dense<0.000000e+00> : vector<2x128xf32>
    %33 = vector.multi_reduction <add>, %32, %cst_24 [1] : vector<2x2x128xf32> to vector<2x128xf32>
    %cst_25 = arith.constant dense<0.000000e+00> : vector<2x128xf32>
    %34 = vector.multi_reduction <add>, %31, %cst_25 [1] : vector<2x2x128xf32> to vector<2x128xf32>
    %35 = vector.shape_cast %1 : vector<2x128xf32> to vector<1x2x128xf32>
    %36 = vector.shape_cast %11 : vector<2x128xf32> to vector<1x2x128xf32>
    %37 = vector.shape_cast %12 : vector<2x128xf32> to vector<1x2x128xf32>
    %38 = vector.shape_cast %22 : vector<2x128xf32> to vector<1x2x128xf32>
    %39 = vector.shape_cast %23 : vector<2x128xf32> to vector<1x2x128xf32>
    %40 = vector.shape_cast %33 : vector<2x128xf32> to vector<1x2x128xf32>
    %41 = vector.shape_cast %34 : vector<2x128xf32> to vector<1x2x128xf32>
    %42 = tpu.concatenate %35, %36, %37, %38, %39, %40, %41 in 0 : vector<1x2x128xf32>, vector<1x2x128xf32>, vector<1x2x128xf32>, vector<1x2x128xf32>, vector<1x2x128xf32>, vector<1x2x128xf32>, vector<1x2x128xf32> -> vector<7x2x128xf32>
    %43 = vector.shape_cast %42 : vector<7x2x128xf32> to vector<1x7x2x128xf32>
    %c0_26 = arith.constant 0 : index
    %c0_27 = arith.constant 0 : index
    %c0_28 = arith.constant 0 : index
    %c0_29 = arith.constant 0 : index
    %44 = vector.load %arg5[%c0_26, %c0_27, %c0_28, %c0_29] : memref<1x7x2x128xf32, #tpu.memory_space<vmem>>, vector<1x7x2x128xf32>
    tpu.vector_store %arg5[%c0_26, %c0_27, %c0_28, %c0_29], %43 {strides = array<i32>} : memref<1x7x2x128xf32, #tpu.memory_space<vmem>>, vector<1x7x2x128xf32>,
    return
  }
  func.func @transform_0(%arg0: i32) -> (i32, i32, i32) {
    %c0_i32 = arith.constant 0 : i32
    %c0_i32_0 = arith.constant 0 : i32
    %c0_i32_1 = arith.constant 0 : i32
    return %c0_i32, %arg0, %c0_i32_0 : i32, i32, i32
  }
  func.func @transform_1(%arg0: i32) -> (i32, i32, i32) {
    %c0_i32 = arith.constant 0 : i32
    %c0_i32_0 = arith.constant 0 : i32
    %c0_i32_1 = arith.constant 0 : i32
    return %c0_i32, %arg0, %c0_i32_0 : i32, i32, i32
  }
  func.func @transform_2(%arg0: i32) -> (i32, i32, i32) {
    %c0_i32 = arith.constant 0 : i32
    %c0_i32_0 = arith.constant 0 : i32
    %c0_i32_1 = arith.constant 0 : i32
    return %c0_i32, %arg0, %c0_i32_0 : i32, i32, i32
  }
  func.func @transform_3(%arg0: i32) -> (i32, i32, i32) {
    %c0_i32 = arith.constant 0 : i32
    %c0_i32_0 = arith.constant 0 : i32
    %c0_i32_1 = arith.constant 0 : i32
    return %c0_i32, %arg0, %c0_i32_0 : i32, i32, i32
  }
  func.func @transform_4(%arg0: i32) -> (i32, i32, i32, i32) {
    %c0_i32 = arith.constant 0 : i32
    %c0_i32_0 = arith.constant 0 : i32
    %c0_i32_1 = arith.constant 0 : i32
    %c0_i32_2 = arith.constant 0 : i32
    return %arg0, %c0_i32, %c0_i32_0, %c0_i32_1 : i32, i32, i32, i32
  }
}

</mosaic_0001>

<bundles_post_ra>
// kernel: tpu_custom_call.1
= control target key start
LH: loop header
LB: loop body
LE: loop exit
PB: predicated region body
PF: predicated region fallthrough
CT: control target
= control target key end

     0   :  { %9 = vsyncpa [#allocation3], 0  ;;  %s524_s0 = inlined_call_operand.hbm [shape: f32[2,2,128], index: 0, kind: input, shape index: {}]   ;;  %s525_s1 = inlined_call_operand.hbm [shape: f32[2,2,128], index: 1, kind: input, shape index: {}]   ;;  %s526_s2 = inlined_call_operand.hbm [shape: f32[2,2,128], index: 2, kind: input, shape index: {}]   ;;  %s527_s3 = inlined_call_operand.hbm [shape: f32[2,2,128], index: 3, kind: input, shape index: {}]   ;;  %s528_s4 = inlined_call_operand.hbm [shape: f32[1,7,2,128], index: 4, kind: output, shape index: {}]  }
   0x1   :  { %10 = vsyncpa [#allocation6], 0 }
   0x2   :  { %11 = vsyncpa [#allocation9], 0 }
   0x3   :  { %12 = vsyncpa [#allocation4], 0  ;;  %s30_s17 = sshll.u32 %s525_s1, 4  ;;  %s429_s18 = smov [#allocation5]   ;;  %s31_s17 = int_to_ptr.hbm [resolvable:$true] %s30_s17 }
   0x4   :  { %s32_s19 = sshll.u32 %s429_s18, 4  ;;  %s17_s22 = sshll.u32 %s524_s0, 4  ;;  %s33_s19 = int_to_ptr.vmem [resolvable:$true] %s32_s19  ;;  %s18_s22 = int_to_ptr.hbm [resolvable:$true] %s17_s22 }
   0x5   :  { %s430_s23 = smov 32   ;;  %s431_s24 = smov 2  }
   0x6   :  { %38 = dma.hbm_to_vmem [thread:$0]  %s31_s17, 64, %s33_s19, [#allocation6], %s430_s23, %s430_s23, %s431_s24  }
   0x7   :  { %s432_s25 = smov [#allocation2]   ;;  %s43_s1 = sshll.u32 %s526_s2, 4  ;;  %s44_s1 = int_to_ptr.hbm [resolvable:$true] %s43_s1 }
   0x8   :  { %s19_s26 = sshll.u32 %s432_s25, 4  ;;  %s56_s30 = sshll.u32 %s527_s3, 4  ;;  %s20_s26 = int_to_ptr.vmem [resolvable:$true] %s19_s26  ;;  %s57_s30 = int_to_ptr.hbm [resolvable:$true] %s56_s30 }
   0x9   :  { %25 = dma.hbm_to_vmem [thread:$0]  %s18_s22, 64, %s20_s26, [#allocation3], %s430_s23, %s430_s23, %s431_s24  }
   0xa   :  { %s433_s5 = smov [#allocation7]   ;;  %s434_s7 = smov [#allocation8]  }
   0xb   :  { %s45_s6 = sshll.u32 %s433_s5, 4  ;;  %s58_s2 = sshll.u32 %s434_s7, 4  ;;  %s46_s6 = int_to_ptr.vmem [resolvable:$true] %s45_s6  ;;  %s59_s2 = int_to_ptr.vmem [resolvable:$true] %s58_s2 }
   0xc   :  { %51 = dma.hbm_to_vmem [thread:$0]  %s44_s1, 64, %s46_s6, [#allocation6], %s430_s23, %s430_s23, %s431_s24  }
   0xd   :  { %64 = dma.hbm_to_vmem [thread:$0]  %s57_s30, 64, %s59_s2, [#allocation9], %s430_s23, %s430_s23, %s431_s24  }
   0xe   :  { %421 = dma.done.wait [#allocation3], 64  }
   0xf   :  { %422 = vsyncadd [#allocation3], 4294967232 }
  0x10   :  { %423 = dma.done.wait [#allocation6], 128  }
  0x11   :  { %424 = vsyncadd [#allocation6], 4294967168 }
  0x12   :  { %425 = dma.done.wait [#allocation9], 64  }
  0x13   :  { %426 = vsyncadd [#allocation9], 4294967232  ;;  %vm83_vm0 = vcmask 1041408   ;;  %v485_v0 = vld [vmem:[#allocation8] sm:$0x3]  ;;  %vm233_vm1 = vcmask 1041409  }
  0x14   :  { %v487_v1 = vld [vmem:[#allocation8 + $0x2] sm:$0x3]  ;;  %v98_v2 = vld [vmem:[#allocation2] sm:$0x3]  ;;  %v84_v3 = vsel %vm83_vm0, %v485_v0, 0.0  ;;  %s435_s3 = smov [#allocation10]  }
  0x15   :  { %v91_v4 = vsel %vm83_vm0, %v487_v1, 0.0  ;;  %v99_v5 = vld [vmem:[#allocation2 + $0x2] sm:$0x3]  ;;  %v100_v6 = vmul.f32 0.5, %v98_v2  ;;  %v85_v7 = vrot.slane %v84_v3, 4  ;;  %s265_s8 = sshll.u32 %s435_s3, 4  ;;  %s266_s8 = int_to_ptr.vmem [resolvable:$true] %s265_s8 }
  0x16   :  { %v92_v8 = vrot.slane %v91_v4, 4  ;;  %v101_v9 = vmul.f32 0.5, %v99_v5  ;;  %v138_v10 = vld [vmem:[#allocation5] sm:$0x3]  ;;  %v139_v11 = vld [vmem:[#allocation5 + $0x2] sm:$0x3] }
  0x17   :  { %289 = vtanh.f32 %v100_v6  ;;  %v140_v12 = vmul.f32 0.5, %v138_v10  ;;  %v86_v13 = vadd.f32 %v85_v7, %v84_v3  ;;  %v141_v15 = vmul.f32 0.5, %v139_v11  ;;  %v178_v16 = vld [vmem:[#allocation7] sm:$0x3]  ;;  %v179_v19 = vld [vmem:[#allocation7 + $0x2] sm:$0x3] }
  0x18   :  { %v93_v14 = vadd.f32 %v92_v8, %v91_v4  ;;  %291 = vtanh.f32 %v101_v9  ;;  %v180_v20 = vmul.f32 0.5, %v178_v16  ;;  %v181_v24 = vmul.f32 0.5, %v179_v19  ;;  %s267_s11 = sshll.u32 %s528_s4, 4  ;;  %s268_s11 = int_to_ptr.hbm [resolvable:$true] %s267_s11 }
  0x19   :  { %293 = vtanh.f32 %v140_v12  ;;  %v87_v17 = vrot.slane %v86_v13, 2 }
  0x1a   :  { %v94_v18 = vrot.slane %v93_v14, 2  ;;  %295 = vtanh.f32 %v141_v15 }
  0x1b   :  { %v88_v21 = vadd.f32 %v87_v17, %v86_v13  ;;  %297 = vtanh.f32 %v180_v20 }
  0x1c   :  { %v95_v22 = vadd.f32 %v94_v18, %v93_v14  ;;  %299 = vtanh.f32 %v181_v24 }
  0x1d   :  { %v290_v23 = vpop.eup %289  ;;  %v89_v26 = vrot.slane %v88_v21, 1 }
  0x1e   :  { %v292_v25 = vpop.eup %291  ;;  %v96_v27 = vrot.slane %v95_v22, 1  ;;  %v104_v28 = vmul.f32 0.5, %v290_v23 }
  0x1f   :  { %v294_v29 = vpop.eup %293  ;;  %v105_v30 = vmul.f32 0.5, %v292_v25  ;;  %v90_v32 = vadd.f32 %v89_v26, %v88_v21 }
  0x20   :  { %v296_v31 = vpop.eup %295  ;;  %v97_v33 = vadd.f32 %v96_v27, %v95_v22  ;;  %v106_v34 = vadd.f32 0.5, %v104_v28  ;;  %v144_v35 = vmul.f32 0.5, %v294_v29 }
  0x21   :  { %v107_v36 = vadd.f32 0.5, %v105_v30  ;;  %v145_v37 = vmul.f32 0.5, %v296_v31  ;;  %v298_v50 = vpop.eup %297 }
  0x22   :  { %v232_v38 = vrot.slane %v97_v33, 7  ;;  %v108_v39 = vmul.f32 %v106_v34, %v485_v0  ;;  %v124_v40 = vsel %vm83_vm0, %v106_v34, 0.0  ;;  %v146_v41 = vadd.f32 0.5, %v144_v35  ;;  %v300_v59 = vpop.eup %299 }
  0x23   :  { %v109_v42 = vmul.f32 %v107_v36, %v487_v1  ;;  %v125_v43 = vrot.slane %v124_v40, 4  ;;  %v131_v44 = vsel %vm83_vm0, %v107_v36, 0.0  ;;  %v147_v45 = vadd.f32 0.5, %v145_v37 }
  0x24   :  { %v234_v46 = vsel %vm233_vm1, %v232_v38, %v90_v32  ;;  %v110_v47 = vsel %vm83_vm0, %v108_v39, 0.0  ;;  %v132_v48 = vrot.slane %v131_v44, 4  ;;  %v148_v49 = vmul.f32 %v146_v41, %v485_v0 }
  0x25   :  { %254 = vst [vmem:[#allocation10] sm:$0x3] %v234_v46  ;;  %v111_v51 = vrot.slane %v110_v47, 4  ;;  %v117_v52 = vsel %vm83_vm0, %v109_v42, 0.0  ;;  %v126_v53 = vadd.f32 %v125_v43, %v124_v40  ;;  %v149_v54 = vmul.f32 %v147_v45, %v487_v1 }
  0x26   :  { %v118_v55 = vrot.slane %v117_v52, 4  ;;  %v133_v56 = vadd.f32 %v132_v48, %v131_v44  ;;  %v150_v57 = vsel %vm83_vm0, %v148_v49, 0.0  ;;  %v164_v58 = vsel %vm83_vm0, %v146_v41, 0.0 }
  0x27   :  { %v112_v60 = vadd.f32 %v111_v51, %v110_v47  ;;  %v127_v61 = vrot.slane %v126_v53, 2  ;;  %v151_v62 = vrot.slane %v150_v57, 4  ;;  %v157_v63 = vsel %vm83_vm0, %v149_v54, 0.0 }
  0x28   :  { %v119_v2 = vadd.f32 %v118_v55, %v117_v52  ;;  %v134_v3 = vrot.slane %v133_v56, 2  ;;  %v158_v4 = vrot.slane %v157_v63, 4  ;;  %v165_v5 = vrot.slane %v164_v58, 4 }
  0x29   :  { %v113_v6 = vrot.slane %v112_v60, 2  ;;  %v128_v7 = vadd.f32 %v127_v61, %v126_v53  ;;  %v152_v8 = vadd.f32 %v151_v62, %v150_v57  ;;  %v171_v9 = vsel %vm83_vm0, %v147_v45, 0.0 }
  0x2a   :  { %v120_v10 = vrot.slane %v119_v2, 2  ;;  %v135_v11 = vadd.f32 %v134_v3, %v133_v56  ;;  %v159_v12 = vadd.f32 %v158_v4, %v157_v63  ;;  %v166_v13 = vadd.f32 %v165_v5, %v164_v58 }
  0x2b   :  { %v114_v14 = vadd.f32 %v113_v6, %v112_v60  ;;  %v129_v15 = vrot.slane %v128_v7, 1  ;;  %v153_v16 = vrot.slane %v152_v8, 2  ;;  %v172_v17 = vrot.slane %v171_v9, 4 }
  0x2c   :  { %v121_v18 = vadd.f32 %v120_v10, %v119_v2  ;;  %v136_v19 = vrot.slane %v135_v11, 1  ;;  %v160_v20 = vrot.slane %v159_v12, 2  ;;  %v167_v21 = vrot.slane %v166_v13, 2 }
  0x2d   :  { %v115_v22 = vrot.slane %v114_v14, 1  ;;  %v130_v23 = vadd.f32 %v129_v15, %v128_v7  ;;  %v154_v24 = vadd.f32 %v153_v16, %v152_v8  ;;  %v173_v25 = vadd.f32 %v172_v17, %v171_v9 }
  0x2e   :  { %v122_v26 = vrot.slane %v121_v18, 1  ;;  %v137_v27 = vadd.f32 %v136_v19, %v135_v11  ;;  %v161_v28 = vadd.f32 %v160_v20, %v159_v12  ;;  %v168_v29 = vadd.f32 %v167_v21, %v166_v13 }
  0x2f   :  { %v116_v30 = vadd.f32 %v115_v22, %v114_v14  ;;  %v155_v31 = vrot.slane %v154_v24, 1  ;;  %v174_v32 = vrot.slane %v173_v25, 2  ;;  %v184_v33 = vmul.f32 0.5, %v298_v50 }
  0x30   :  { %v123_v34 = vadd.f32 %v122_v26, %v121_v18  ;;  %v237_v35 = vrot.slane %v137_v27, 7  ;;  %v162_v36 = vrot.slane %v161_v28, 1  ;;  %v169_v37 = vrot.slane %v168_v29, 1 }
  0x31   :  { %v175_v38 = vadd.f32 %v174_v32, %v173_v25  ;;  %v185_v39 = vmul.f32 0.5, %v300_v59  ;;  %v186_v40 = vadd.f32 0.5, %v184_v33  ;;  %v156_v43 = vadd.f32 %v155_v31, %v154_v24 }
  0x32   :  { %v235_v41 = vrot.slane %v123_v34, 7  ;;  %v238_v42 = vsel %vm233_vm1, %v237_v35, %v130_v23  ;;  %v163_v44 = vadd.f32 %v162_v36, %v161_v28  ;;  %v170_v51 = vadd.f32 %v169_v37, %v168_v29 }
  0x33   :  { %256 = vst [vmem:[#allocation10 + $0x4] sm:$0x3] %v238_v42  ;;  %v176_v45 = vrot.slane %v175_v38, 1  ;;  %v187_v46 = vadd.f32 0.5, %v185_v39  ;;  %v188_v47 = vmul.f32 %v186_v40, %v485_v0  ;;  %v204_v48 = vsel %vm83_vm0, %v186_v40, 0.0 }
  0x34   :  { %v236_v49 = vsel %vm233_vm1, %v235_v41, %v116_v30  ;;  %v239_v50 = vrot.slane %v163_v44, 7  ;;  %v205_v52 = vrot.slane %v204_v48, 4 }
  0x35   :  { %255 = vst [vmem:[#allocation10 + $0x2] sm:$0x3] %v236_v49  ;;  %v177_v53 = vadd.f32 %v176_v45, %v175_v38  ;;  %v189_v54 = vmul.f32 %v187_v46, %v487_v1  ;;  %v190_v55 = vsel %vm83_vm0, %v188_v47, 0.0  ;;  %v211_v56 = vsel %vm83_vm0, %v187_v46, 0.0 }
  0x36   :  { %v240_v57 = vsel %vm233_vm1, %v239_v50, %v156_v43  ;;  %v191_v58 = vrot.slane %v190_v55, 4  ;;  %v206_v59 = vadd.f32 %v205_v52, %v204_v48  ;;  %v212_v0 = vrot.slane %v211_v56, 4 }
  0x37   :  { %257 = vst [vmem:[#allocation10 + $0x6] sm:$0x3] %v240_v57  ;;  %v241_v60 = vrot.slane %v177_v53, 7  ;;  %v197_v61 = vsel %vm83_vm0, %v189_v54, 0.0 }
  0x38   :  { %v192_v62 = vadd.f32 %v191_v58, %v190_v55  ;;  %v198_v63 = vrot.slane %v197_v61, 4  ;;  %v207_v2 = vrot.slane %v206_v59, 2  ;;  %v213_v3 = vadd.f32 %v212_v0, %v211_v56 }
  0x39   :  { %v242_v4 = vsel %vm233_vm1, %v241_v60, %v170_v51 }
  0x3a   :  { %258 = vst [vmem:[#allocation10 + $0x8] sm:$0x3] %v242_v4  ;;  %v193_v1 = vrot.slane %v192_v62, 2  ;;  %v199_v5 = vadd.f32 %v198_v63, %v197_v61  ;;  %v208_v6 = vadd.f32 %v207_v2, %v206_v59  ;;  %v214_v7 = vrot.slane %v213_v3, 2 }
  0x3c   :  { %v194_v8 = vadd.f32 %v193_v1, %v192_v62  ;;  %v200_v9 = vrot.slane %v199_v5, 2  ;;  %v209_v10 = vrot.slane %v208_v6, 1  ;;  %v215_v11 = vadd.f32 %v214_v7, %v213_v3 }
  0x3e   :  { %v195_v12 = vrot.slane %v194_v8, 1  ;;  %v201_v13 = vadd.f32 %v200_v9, %v199_v5  ;;  %v216_v14 = vrot.slane %v215_v11, 1  ;;  %v210_v16 = vadd.f32 %v209_v10, %v208_v6 }
  0x40   :  { %v202_v15 = vrot.slane %v201_v13, 1  ;;  %v217_v17 = vadd.f32 %v216_v14, %v215_v11  ;;  %v196_v18 = vadd.f32 %v195_v12, %v194_v8 }
  0x42   :  { %v203_v19 = vadd.f32 %v202_v15, %v201_v13  ;;  %v245_v20 = vrot.slane %v217_v17, 7 }
  0x44   :  { %v243_v21 = vrot.slane %v203_v19, 7  ;;  %v246_v22 = vsel %vm233_vm1, %v245_v20, %v210_v16 }
  0x45   :  { %260 = vst [vmem:[#allocation10 + $0xc] sm:$0x3] %v246_v22 }
  0x46   :  { %v244_v23 = vsel %vm233_vm1, %v243_v21, %v196_v18 }
  0x47   :  { %259 = vst [vmem:[#allocation10 + $0xa] sm:$0x3] %v244_v23 }
  0x48   :  { %273 = dma.vmem_to_hbm [thread:$0]  %s266_s8, 224, %s268_s11, [#allocation4], %s430_s23, %s430_s23, %s431_s24  }
  0x49   :  { %427 = dma.done.wait [#allocation4], 224  }
  0x4a   :  { %428 = vsyncadd [#allocation4], 4294967072 }
  0x4b   :  { %278 = vsyncpa [#allocation3], 1 }
  0x4c   :  { %279 = vsyncpa [#allocation6], 1 }
  0x4d   :  { %280 = vsyncpa [#allocation9], 1 }
  0x4e   :  { %281 = vsyncpa [#allocation4], 1 }

</bundles_post_ra>
